<compile_context>
chip_gen: v5e
topology: v5e:2x2
jax: 0.10.0
libtpu: 0.0.40
codegen_flags: <defaults>
</compile_context>

<pallas_src>
import functools

import jax
import jax.numpy as jnp
from jax.experimental import pallas as pl
from jax.experimental.pallas import tpu as pltpu


def _round_up(x, m):
    return ((x + m - 1) // m) * m


def _qnetwork_kernel(xu_ref, w12_ref, b12_ref, w3_ref, b3_ref, o_ref, *,
                     in_pad, h2):
    """Fused twin-Q MLP forward: 3 matmuls on a doubled hidden (2H)."""
    # Layer 1: one K=in_pad dot against the fused [W1 | W4] rows.  All weight
    # accesses are static, 8-aligned Ref slices (zero-cost views).
    h = (jnp.dot(xu_ref[...], w12_ref[0:in_pad, :],
                 preferred_element_type=jnp.float32) + b12_ref[0:1, :])
    h = jnp.maximum(h, 0.0)

    # Layer 2: block-diagonal [[W2, 0], [0, W5]] keeps the Q1/Q2 branches independent.
    # TODO(synk): for hidden_dim >= 128, run two separate H x H dots instead of the
    # block-diag (2H, 2H) to avoid wasting 50% of layer-2 MXU flops on zeros.
    h = (jnp.dot(h, w12_ref[in_pad:in_pad + h2, :],
                 preferred_element_type=jnp.float32) + b12_ref[1:2, :])
    h = jnp.maximum(h, 0.0)

    # Layer 3: narrow (2H, 8) weight -> (tb, 8) output; col 0 = q1, col 1 = q2.
    o_ref[...] = (jnp.dot(h, w3_ref[...], preferred_element_type=jnp.float32)
                  + b3_ref[...]).astype(o_ref.dtype)


def _choose_batch_tile(B):
    # Small batch: one full-batch tile (block dim == array dim satisfies the (8,128)
    # rule).  Otherwise: >=2 grid steps (so v7x's 2 TensorCores both get work),
    # tile rows a multiple of 8, capped at 1024 rows to amortize the ~0.35 us/step
    # pipeline overhead while staying far under every chip's scoped-VMEM budget.
    if B <= 8:
        return B
    half = _round_up(pl.cdiv(B, 2), 8)
    return min(1024, half)


@jax.jit
def qnetwork_forward(state, action, params):
    """Returns (q1, q2), each (B, 1), matching QNetwork.forward(state, action)."""
    w12, b12 = params["w12"], params["b12"]
    w3, b3 = params["w3"], params["b3"]
    B, s_dim = state.shape
    a_dim = action.shape[1]
    h2 = w12.shape[1]                  # 2 * hidden_dim
    in_pad = w12.shape[0] - h2         # 8-aligned padded (state + action) width
    out_w = w3.shape[1]                # 8

    # Wrapper-side concat state||action (+ zero pad to in_pad cols): one fused
    # first-layer dot and a single activation DMA stream per grid step.
    pad = in_pad - (s_dim + a_dim)
    pieces = [state, action]
    if pad > 0:
        pieces.append(jnp.zeros((B, pad), state.dtype))
    xu = jnp.concatenate(pieces, axis=1)

    tb = _choose_batch_tile(B)
    grid = (pl.cdiv(B, tb),)

    out = pl.pallas_call(
        functools.partial(_qnetwork_kernel, in_pad=in_pad, h2=h2),
        out_shape=jax.ShapeDtypeStruct((B, out_w), jnp.float32),
        grid_spec=pltpu.PrefetchScalarGridSpec(
            num_scalar_prefetch=0,
            grid=grid,
            in_specs=[
                pl.BlockSpec((tb, in_pad), lambda i: (i, 0)),
                pl.BlockSpec(w12.shape, lambda i: (0, 0)),   # VMEM-resident weights
                pl.BlockSpec(b12.shape, lambda i: (0, 0)),
                pl.BlockSpec(w3.shape, lambda i: (0, 0)),
                pl.BlockSpec(b3.shape, lambda i: (0, 0)),
            ],
            out_specs=pl.BlockSpec((tb, out_w), lambda i: (i, 0)),
        ),
        compiler_params=pltpu.CompilerParams(
            dimension_semantics=("parallel",),
            vmem_limit_bytes=32 * 1024 * 1024,   # explicit; safe on v5e/v6e/v7x
        ),
    )(xu, w12, b12, w3, b3)

    return out[:, 0:1], out[:, 1:2]


def _xavier_uniform(key, fan_in, fan_out, dtype=jnp.float32):
    # Matches torch.nn.init.xavier_uniform_(w, gain=1): U(-a, a), a = sqrt(6/(fi+fo)).
    bound = (6.0 / (fan_in + fan_out)) ** 0.5
    return jax.random.uniform(key, (fan_in, fan_out), dtype,
                              minval=-bound, maxval=bound)


def init_qnetwork_params(key, state_dim, action_dim, hidden_dim):
    """Per-layer params stored as (in_features, out_features); biases zero."""
    in_dim = state_dim + action_dim
    keys = jax.random.split(key, 6)
    layer_dims = [(in_dim, hidden_dim), (hidden_dim, hidden_dim), (hidden_dim, 1),
                  (in_dim, hidden_dim), (hidden_dim, hidden_dim), (hidden_dim, 1)]
    raw = {}
    for idx, (k, (fi, fo)) in enumerate(zip(keys, layer_dims), start=1):
        raw[f"w{idx}"] = _xavier_uniform(k, fi, fo)
        raw[f"b{idx}"] = jnp.zeros((1, fo), jnp.float32)   # constant_(bias, 0)
    return raw


def pack_qnetwork_params(raw, state_dim, action_dim, hidden_dim,
                         dtype=jnp.float32):
    """Pack the 12 per-layer arrays into the 4 slabs consumed by the kernel.

    NOTE: bf16 slabs only help MXU throughput if the activations (xu and the
    intermediate h) are also cast to bf16 in the kernel; with f32 activations a
    mixed dot promotes back to f32.  Keep float32 on v5e and for exact parity.
    """
    h = hidden_dim
    h2 = 2 * h
    in_dim = state_dim + action_dim
    in_pad = _round_up(in_dim, 8)

    # Fused first layer [W1 | W4], zero-padded to in_pad rows (8-aligned sections).
    w1f = jnp.concatenate([raw["w1"], raw["w4"]], axis=1)                 # (in_dim, 2H)
    if in_pad > in_dim:
        w1f = jnp.concatenate(
            [w1f, jnp.zeros((in_pad - in_dim, h2), jnp.float32)], axis=0)  # (in_pad, 2H)
    # Fused second layer: block-diagonal keeps Q1/Q2 branches independent.
    w2f = jnp.zeros((h2, h2), jnp.float32)
    w2f = w2f.at[:h, :h].set(raw["w2"]).at[h:, h:].set(raw["w5"])         # (2H, 2H)
    w12 = jnp.concatenate([w1f, w2f], axis=0).astype(dtype)               # (in_pad+2H, 2H)

    b12 = jnp.concatenate(
        [jnp.concatenate([raw["b1"], raw["b4"]], axis=1),
         jnp.concatenate([raw["b2"], raw["b5"]], axis=1)], axis=0).astype(dtype)  # (2, 2H)

    # Narrow third layer: only columns 0 (q1) and 1 (q2) are live; pad to 8 cols.
    w3 = jnp.zeros((h2, 8), jnp.float32)
    w3 = w3.at[:h, 0:1].set(raw["w3"]).at[h:, 1:2].set(raw["w6"]).astype(dtype)   # (2H, 8)
    b3 = jnp.zeros((1, 8), jnp.float32)
    b3 = b3.at[:, 0:1].set(raw["b3"]).at[:, 1:2].set(raw["b6"]).astype(dtype)     # (1, 8)

    return {"w12": w12, "b12": b12, "w3": w3, "b3": b3}


def _reference_forward(state, action, raw):
    """Pure-JAX reference mirroring the PyTorch forward, for sanity checking."""
    xu = jnp.concatenate([state, action], axis=1)
    h = jnp.maximum(xu @ raw["w1"] + raw["b1"], 0.0)
    h = jnp.maximum(h @ raw["w2"] + raw["b2"], 0.0)
    q1 = h @ raw["w3"] + raw["b3"]
    g = jnp.maximum(xu @ raw["w4"] + raw["b4"], 0.0)
    g = jnp.maximum(g @ raw["w5"] + raw["b5"], 0.0)
    q2 = g @ raw["w6"] + raw["b6"]
    return q1, q2


if __name__ == "__main__":
    batch = 2
    state_dim = 8
    action_dim = 4
    hidden_dim = 32

    key = jax.random.PRNGKey(0)
    k_params, k_state, k_action = jax.random.split(key, 3)

    raw = init_qnetwork_params(k_params, state_dim, action_dim, hidden_dim)
    params = pack_qnetwork_params(raw, state_dim, action_dim, hidden_dim)
    state = jax.random.normal(k_state, (batch, state_dim), jnp.float32)
    action = jax.random.normal(k_action, (batch, action_dim), jnp.float32)

    q1, q2 = qnetwork_forward(state, action, params)
    q1 = jax.block_until_ready(q1)
    q2 = jax.block_until_ready(q2)

    r1, r2 = _reference_forward(state, action, raw)
    assert q1.shape == (batch, 1) and q2.shape == (batch, 1)
    assert jnp.allclose(q1, r1, atol=1e-4, rtol=1e-4), "Q1 mismatch vs reference"
    assert jnp.allclose(q2, r2, atol=1e-4, rtol=1e-4), "Q2 mismatch vs reference"

    print("KERNEL_OK")
</pallas_src>

<mosaic_0001>
module attributes {stable_mosaic.version = 11 : i64} {
  func.func @_qnetwork_kernel(%arg0: i32, %arg1: memref<2x16xf32, #tpu.memory_space<vmem>>, %arg2: memref<80x64xf32, #tpu.memory_space<vmem>>, %arg3: memref<2x64xf32, #tpu.memory_space<vmem>>, %arg4: memref<64x8xf32, #tpu.memory_space<vmem>>, %arg5: memref<1x8xf32, #tpu.memory_space<vmem>>, %arg6: memref<2x8xf32, #tpu.memory_space<vmem>>) attributes {dimension_semantics = [#tpu.dimension_semantics<parallel>], iteration_bounds = array<i64: 1>, scalar_prefetch = 0 : i64, scratch_operands = 0 : i64, tpu.core_type = #tpu.core_type<tc>, window_params = [{transform_indices = @transform_0, window_bounds = array<i64: 2, 16>}, {pipeline_mode = #tpu.pipeline_mode<synchronous>, transform_indices = @transform_1, window_bounds = array<i64: 80, 64>}, {pipeline_mode = #tpu.pipeline_mode<synchronous>, transform_indices = @transform_2, window_bounds = array<i64: 2, 64>}, {pipeline_mode = #tpu.pipeline_mode<synchronous>, transform_indices = @transform_3, window_bounds = array<i64: 64, 8>}, {pipeline_mode = #tpu.pipeline_mode<synchronous>, transform_indices = @transform_4, window_bounds = array<i64: 1, 8>}, {transform_indices = @transform_5, window_bounds = array<i64: 2, 8>}]} {
    %c0 = arith.constant 0 : index
    %c0_0 = arith.constant 0 : index
    %0 = vector.load %arg1[%c0, %c0_0] : memref<2x16xf32, #tpu.memory_space<vmem>>, vector<2x16xf32>
    %c0_1 = arith.constant 0 : index
    %c0_2 = arith.constant 0 : index
    %1 = vector.load %arg2[%c0_1, %c0_2] : memref<80x64xf32, #tpu.memory_space<vmem>>, vector<16x64xf32>
    %cst = arith.constant dense<0.000000e+00> : vector<2x64xf32>
    %2 = tpu.matmul %0, %1, %cst {dimension_numbers = #tpu.dot_dimension_numbers<[1], [0], [0], [1], [0, 0, 1, 1], [], []>} : vector<2x16xf32>, vector<16x64xf32>, vector<2x64xf32> -> vector<2x64xf32>
    %c0_3 = arith.constant 0 : index
    %c0_4 = arith.constant 0 : index
    %3 = vector.load %arg3[%c0_3, %c0_4] : memref<2x64xf32, #tpu.memory_space<vmem>>, vector<1x64xf32>
    %4 = vector.broadcast %3 : vector<1x64xf32> to vector<2x64xf32>
    %5 = arith.addf %2, %4 : vector<2x64xf32>
    %cst_5 = arith.constant 0.000000e+00 : f32
    %6 = vector.broadcast %cst_5 : f32 to vector<2x64xf32>
    %7 = arith.maximumf %5, %6 : vector<2x64xf32>
    %c16 = arith.constant 16 : index
    %c0_6 = arith.constant 0 : index
    %8 = vector.load %arg2[%c16, %c0_6] : memref<80x64xf32, #tpu.memory_space<vmem>>, vector<64x64xf32>
    %cst_7 = arith.constant dense<0.000000e+00> : vector<2x64xf32>
    %9 = tpu.matmul %7, %8, %cst_7 {dimension_numbers = #tpu.dot_dimension_numbers<[1], [0], [0], [1], [0, 0, 1, 1], [], []>} : vector<2x64xf32>, vector<64x64xf32>, vector<2x64xf32> -> vector<2x64xf32>
    %c1 = arith.constant 1 : index
    %c0_8 = arith.constant 0 : index
    %10 = vector.load %arg3[%c1, %c0_8] : memref<2x64xf32, #tpu.memory_space<vmem>>, vector<1x64xf32>
    %11 = vector.broadcast %10 : vector<1x64xf32> to vector<2x64xf32>
    %12 = arith.addf %9, %11 : vector<2x64xf32>
    %cst_9 = arith.constant 0.000000e+00 : f32
    %13 = vector.broadcast %cst_9 : f32 to vector<2x64xf32>
    %14 = arith.maximumf %12, %13 : vector<2x64xf32>
    %c0_10 = arith.constant 0 : index
    %c0_11 = arith.constant 0 : index
    %15 = vector.load %arg4[%c0_10, %c0_11] : memref<64x8xf32, #tpu.memory_space<vmem>>, vector<64x8xf32>
    %cst_12 = arith.constant dense<0.000000e+00> : vector<2x8xf32>
    %16 = tpu.matmul %14, %15, %cst_12 {dimension_numbers = #tpu.dot_dimension_numbers<[1], [0], [0], [1], [0, 0, 1, 1], [], []>} : vector<2x64xf32>, vector<64x8xf32>, vector<2x8xf32> -> vector<2x8xf32>
    %c0_13 = arith.constant 0 : index
    %c0_14 = arith.constant 0 : index
    %17 = vector.load %arg5[%c0_13, %c0_14] : memref<1x8xf32, #tpu.memory_space<vmem>>, vector<1x8xf32>
    %18 = vector.broadcast %17 : vector<1x8xf32> to vector<2x8xf32>
    %19 = arith.addf %16, %18 : vector<2x8xf32>
    %c0_15 = arith.constant 0 : index
    %c0_16 = arith.constant 0 : index
    %20 = vector.load %arg6[%c0_15, %c0_16] : memref<2x8xf32, #tpu.memory_space<vmem>>, vector<2x8xf32>
    tpu.vector_store %arg6[%c0_15, %c0_16], %19 {strides = array<i32>} : memref<2x8xf32, #tpu.memory_space<vmem>>, vector<2x8xf32>,
    return
  }
  func.func @transform_0(%arg0: i32) -> (i32, i32) {
    %c0_i32 = arith.constant 0 : i32
    %c0_i32_0 = arith.constant 0 : i32
    return %arg0, %c0_i32 : i32, i32
  }
  func.func @transform_1(%arg0: i32) -> (i32, i32) {
    %c0_i32 = arith.constant 0 : i32
    %c0_i32_0 = arith.constant 0 : i32
    %c0_i32_1 = arith.constant 0 : i32
    return %c0_i32, %c0_i32_0 : i32, i32
  }
  func.func @transform_2(%arg0: i32) -> (i32, i32) {
    %c0_i32 = arith.constant 0 : i32
    %c0_i32_0 = arith.constant 0 : i32
    %c0_i32_1 = arith.constant 0 : i32
    return %c0_i32, %c0_i32_0 : i32, i32
  }
  func.func @transform_3(%arg0: i32) -> (i32, i32) {
    %c0_i32 = arith.constant 0 : i32
    %c0_i32_0 = arith.constant 0 : i32
    %c0_i32_1 = arith.constant 0 : i32
    return %c0_i32, %c0_i32_0 : i32, i32
  }
  func.func @transform_4(%arg0: i32) -> (i32, i32) {
    %c0_i32 = arith.constant 0 : i32
    %c0_i32_0 = arith.constant 0 : i32
    %c0_i32_1 = arith.constant 0 : i32
    return %c0_i32, %c0_i32_0 : i32, i32
  }
  func.func @transform_5(%arg0: i32) -> (i32, i32) {
    %c0_i32 = arith.constant 0 : i32
    %c0_i32_0 = arith.constant 0 : i32
    return %arg0, %c0_i32 : i32, i32
  }
}

</mosaic_0001>

<bundles_post_ra>
// kernel: qnetwork_forward.1
= control target key start
LH: loop header
LB: loop body
LE: loop exit
PB: predicated region body
PF: predicated region fallthrough
CT: control target
= control target key end

     0   :  { %vm25_vm0 = vcmask 130048   ;;  %vm60_vm1 = vcmask 523264   ;;  %vm120_vm2 = vcmask 58368   ;;  %s231_s1 = inlined_call_operand.vmem [shape: f32[80,64], index: 1, kind: input, shape index: {}]   ;;  %s232_s0 = inlined_call_operand.vmem [shape: f32[2,16], index: 0, kind: input, shape index: {}]   ;;  %s233_s2 = inlined_call_operand.vmem [shape: f32[2,64], index: 2, kind: input, shape index: {}]   ;;  %s234_s3 = inlined_call_operand.vmem [shape: f32[64,8], index: 3, kind: input, shape index: {}]   ;;  %s235_s4 = inlined_call_operand.vmem [shape: f32[1,8], index: 4, kind: input, shape index: {}]   ;;  %s236_s5 = inlined_call_operand.vmem [shape: f32[2,8], index: 5, kind: output, shape index: {}]  }
   0x1   :  { %v22_v0 = vld [vmem:[%s231_s1 + $0x8] sm:$0xff]  ;;  %v21_v1 = vld [vmem:[%s231_s1] sm:$0xff]  ;;  %v55_v5 = vld [vmem:[%s231_s1 + $0x38] sm:$0xff] }
   0x2   :  { %43 = vmatpush.msra.mxu0 %v22_v0  ;;  %v20_v2 = vld [vmem:[%s232_s0] sm:$0x3]  ;;  %v57_v3 = vld [vmem:[%s231_s1 + $0x48] sm:$0xff]  ;;  %v54_v6 = vld [vmem:[%s231_s1 + $0x30] sm:$0xff] }
   0x3   :  { %v56_v4 = vld [vmem:[%s231_s1 + $0x40] sm:$0xff]  ;;  %72 = vmatpush.msra.mxu1 %v57_v3  ;;  %v53_v7 = vld [vmem:[%s231_s1 + $0x28] sm:$0xff]  ;;  %v51_v9 = vld [vmem:[%s231_s1 + $0x18] sm:$0xff] }
   0x4   :  { %44 = vmatpush.msra.mxu0 %v21_v1  ;;  %v52_v8 = vld [vmem:[%s231_s1 + $0x20] sm:$0xff]  ;;  %v50_v10 = vld [vmem:[%s231_s1 + $0x10] sm:$0xff]  ;;  %v92_v11 = vld [vmem:[%s234_s3 + $0x38] sm:$0xff] }
   0x5   :  { %126 = vmatmul.msk.f32.vlgmr.msra.gmra.mxu0 %vm25_vm0, %v20_v2  ;;  %73 = vmatpush.msra.mxu1 %v56_v4  ;;  %v91_v12 = vld [vmem:[%s234_s3 + $0x30] sm:$0xff]  ;;  %v90_v13 = vld [vmem:[%s234_s3 + $0x28] sm:$0xff]  ;;  %v89_v14 = vld [vmem:[%s234_s3 + $0x20] sm:$0xff] }
   0x6   :  { %108 = vmatpush.msra.mxu2 %v92_v11  ;;  %v88_v15 = vld [vmem:[%s234_s3 + $0x18] sm:$0xff]  ;;  %v129_v16 = vld [vmem:[%s233_s2] ss:$0 sm:$0xff]  ;;  %v87_v20 = vld [vmem:[%s234_s3 + $0x10] sm:$0xff] }
   0x7   :  { %74 = vmatpush.msra.mxu1 %v55_v5  ;;  %v86_v21 = vld [vmem:[%s234_s3 + $0x8] sm:$0xff]  ;;  %v85_v22 = vld [vmem:[%s234_s3] sm:$0xff] }
   0x8   :  { %109 = vmatpush.msra.mxu2 %v91_v12  ;;  %v130_v23 = vld [vmem:[%s233_s2 + $0x1] ss:$0 sm:$0xff]  ;;  %v131_v27 = vld [vmem:[%s235_s4] ss:$0 sm:$0xff] }
   0x9   :  { %75 = vmatpush.msra.mxu1 %v54_v6 }
   0xa   :  { %110 = vmatpush.msra.mxu2 %v90_v13 }
   0xb   :  { %76 = vmatpush.msra.mxu1 %v53_v7 }
   0xc   :  { %111 = vmatpush.msra.mxu2 %v89_v14 }
   0xd   :  { %77 = vmatpush.msra.mxu1 %v52_v8 }
   0xe   :  { %112 = vmatpush.msra.mxu2 %v88_v15 }
   0xf   :  { %78 = vmatpush.msra.mxu1 %v51_v9 }
  0x10   :  { %113 = vmatpush.msra.mxu2 %v87_v20 }
  0x11   :  { %79 = vmatpush.msra.mxu1 %v50_v10 }
  0x12   :  { %114 = vmatpush.msra.mxu2 %v86_v21 }
  0x14   :  { %115 = vmatpush.msra.mxu2 %v85_v22 }
  0x82   :  { %v46_v17 = vpop.f32.mrf.mxu0 }
  0x83   :  { %v47_v18 = vadd.f32 %v129_v16, %v46_v17 }
  0x85   :  { %v49_v19 = vmax.f32 %v47_v18, 0.0 }
  0x87   :  { %127 = vmatmul.msk.f32.vlgmr.msra.gmra.mxu1 %vm60_vm1, %v49_v19 }
 0x104   :  { %v81_v24 = vpop.f32.mrf.mxu1 }
 0x105   :  { %v82_v25 = vadd.f32 %v130_v23, %v81_v24 }
 0x107   :  { %v84_v26 = vmax.f32 %v82_v25, 0.0 }
 0x109   :  { %128 = vmatmul.msk.f32.vlgmr.msra.gmra.mxu2 %vm60_vm1, %v84_v26 }
 0x18c   :  { %v117_v28 = vpop.f32.mrf.mxu2 }
 0x18d   :  { %v118_v29 = vadd.f32 %v131_v27, %v117_v28 }
 0x18f   :  { %121 = vst.msk [vmem:[%s236_s5] sm:$0x3] %vm120_vm2, %v118_v29 }

</bundles_post_ra>
